<compile_context>
chip_gen: v7x
topology: tpu7x:2x2x1
jax: 0.10.0
libtpu: 0.0.40
codegen_flags: <defaults>
</compile_context>

<pallas_src>
import jax
import jax.numpy as jnp
from jax.experimental import pallas as pl
from jax.experimental.pallas import tpu as pltpu


def _round_up(x, m):
    return ((x + m - 1) // m) * m


def _make_kernel(num_layers, tile_points, K, d_in):
    def kernel(x_ref, *refs):
        out_ref = refs[-1]
        # (K, T, D) -> (K*T, D): pure view (T is a multiple of the bf16 sublane tile 16).
        h = x_ref[...].reshape(K * tile_points, d_in)
        for l in range(num_layers):
            w = refs[2 * l][...]                        # (Cin_pad, Cout_pad) bf16, BN scale pre-folded
            t = refs[2 * l + 1][...]                    # (1, Cout_pad)  f32 folded BN shift (+conv bias)
            h = jnp.dot(h, w, preferred_element_type=jnp.float32)   # one big MXU matmul per layer
            h = jnp.maximum(h + t, 0.0)                 # shift + ReLU on the VPU (f32)
            if l + 1 < num_layers:
                h = h.astype(jnp.bfloat16)              # bf16 inputs for the next MXU pass
        # Max over K neighbors: chain of maxima over contiguous, sublane-aligned slabs.
        m = h[0:tile_points]
        for k in range(1, K):
            m = jnp.maximum(m, h[k * tile_points:(k + 1) * tile_points])
        out_ref[...] = m                                # (T, Cout_pad) lane-dense f32 store
    return kernel


def pointnet_conv_forward(agg_feat, layer_params, *, tile_points=2048):
    """agg_feat: (P, K, D) float32 DGL mailbox (P = batch * num_points).
    layer_params: list of (W (Cin, Cout), scale (1, Cout), shift (1, Cout)),
    i.e. eval-mode BatchNorm folded into scale/shift.
    Returns (P, C_out) float32 -- the 'new_feat' of PointNetConv.forward."""
    P, K, D = agg_feat.shape
    num_layers = len(layer_params)
    c_out = layer_params[-1][0].shape[1]
    c_out_pad = _round_up(c_out, 128)

    # Tile sizing: multiple of 16 (bf16 sublane tile, keeps the in-kernel merge a view);
    # clamp so the grid has >= 2 steps when P allows (v7x megacore gets both cores busy).
    tile_points = max(16, (int(tile_points) // 16) * 16)
    if P > 16:
        tile_points = min(tile_points, _round_up(pl.cdiv(P, 2), 16))
    else:
        tile_points = 16
    P_pad = _round_up(P, tile_points)
    grid = (P_pad // tile_points,)

    # Neighbor-major layout + bf16 matmul inputs; pad points up to the tile boundary.
    x = jnp.transpose(agg_feat, (1, 0, 2))             # (K, P, D)
    if P_pad != P:
        x = jnp.pad(x, ((0, 0), (0, P_pad - P), (0, 0)))
    x = x.astype(jnp.bfloat16)

    in_specs = [pl.BlockSpec((K, tile_points, D), lambda i: (0, i, 0))]
    flat_params = []
    prev_dim = D
    mm_flops = 0
    param_bytes = 0
    for (w, s, t) in layer_params:
        cin, cout = w.shape
        cout_pad = _round_up(cout, 128)
        w_folded = (w * s).astype(jnp.float32)          # fold BN scale into the weights (once)
        # Zero-pad channels to 128 lanes: zero cols (this layer) / zero rows (next layer's Cin).
        wp = jnp.zeros((prev_dim, cout_pad), jnp.float32).at[:cin, :cout].set(w_folded)
        tp = jnp.zeros((1, cout_pad), jnp.float32).at[:, :cout].set(
            t.reshape(1, cout).astype(jnp.float32))
        # Small, grid-invariant params: whole-array resident in VMEM, no double-buffering.
        in_specs.append(pl.BlockSpec(memory_space=pltpu.MemorySpace.VMEM))
        in_specs.append(pl.BlockSpec(memory_space=pltpu.MemorySpace.VMEM))
        flat_params += [wp.astype(jnp.bfloat16), tp]
        mm_flops += 2 * P_pad * K * prev_dim * cout_pad
        param_bytes += prev_dim * cout_pad * 2 + cout_pad * 4
        prev_dim = cout_pad

    out_spec = pl.BlockSpec((tile_points, c_out_pad), lambda i: (i, 0))
    bytes_accessed = x.size * 2 + P_pad * c_out_pad * 4 + param_bytes

    out = pl.pallas_call(
        _make_kernel(num_layers, tile_points, K, D),
        out_shape=jax.ShapeDtypeStruct((P_pad, c_out_pad), jnp.float32),
        grid=grid,
        in_specs=in_specs,
        out_specs=out_spec,
        compiler_params=pltpu.CompilerParams(
            dimension_semantics=("parallel",),
            vmem_limit_bytes=32 * 1024 * 1024),
        cost_estimate=pl.CostEstimate(
            flops=int(mm_flops),
            transcendentals=0,
            bytes_accessed=int(bytes_accessed)),
    )(x, *flat_params)
    return out[:P, :c_out]


if __name__ == "__main__":
    key = jax.random.PRNGKey(0)

    # Small shapes consistent with the module: sizes = [D_in, 32, 64].
    # num_points chosen so P does NOT divide the tile -> exercises padding, and the
    # tile clamp still yields a multi-step (parallel) grid.
    sizes = [6, 32, 64]
    batch_size, num_points, K = 2, 13, 4
    P = batch_size * num_points               # total nodes in the mailbox

    keys = jax.random.split(key, 1 + 6 * (len(sizes) - 1))
    agg_feat = jax.random.normal(keys[0], (P, K, sizes[0]), dtype=jnp.float32)

    # Deterministic parameter init; BatchNorm2d folded (eval mode) into scale/shift.
    eps = 1e-5
    layer_params = []
    kidx = 1
    for i in range(1, len(sizes)):
        cin, cout = sizes[i - 1], sizes[i]
        w      = 0.1 * jax.random.normal(keys[kidx], (cin, cout), jnp.float32); kidx += 1
        conv_b = 0.1 * jax.random.normal(keys[kidx], (cout,), jnp.float32);     kidx += 1
        gamma  = 1.0 + 0.1 * jax.random.normal(keys[kidx], (cout,), jnp.float32); kidx += 1
        beta   = 0.1 * jax.random.normal(keys[kidx], (cout,), jnp.float32);     kidx += 1
        rmean  = 0.1 * jax.random.normal(keys[kidx], (cout,), jnp.float32);     kidx += 1
        rvar   = jnp.abs(1.0 + 0.1 * jax.random.normal(keys[kidx], (cout,), jnp.float32)); kidx += 1
        scale = gamma / jnp.sqrt(rvar + eps)
        shift = beta + (conv_b - rmean) * scale
        layer_params.append((w, scale.reshape(1, cout), shift.reshape(1, cout)))

    out = pointnet_conv_forward(agg_feat, layer_params, tile_points=64)
    out = jax.block_until_ready(out)

    # Pure-JAX f32 reference (same math) for a sanity check.
    h = agg_feat
    for (w, s, t) in layer_params:
        h = jnp.maximum(jnp.einsum('pkd,de->pke', h, w) * s + t, 0.0)
    ref = jnp.max(h, axis=1)

    assert out.shape == (P, sizes[-1]), out.shape
    # bf16 matmul inputs (f32 accumulation) -> relaxed tolerance vs the f32 reference.
    assert jnp.allclose(out, ref, atol=2e-2, rtol=2e-2), "mismatch vs reference"
    print("KERNEL_OK")
</pallas_src>

<mosaic_0001>
module attributes {stable_mosaic.version = 11 : i64} {
  func.func @kernel(%arg0: i32, %arg1: memref<4x16x6xbf16, #tpu.memory_space<vmem>>, %arg2: memref<6x128xbf16, #tpu.memory_space<vmem>>, %arg3: memref<1x128xf32, #tpu.memory_space<vmem>>, %arg4: memref<128x128xbf16, #tpu.memory_space<vmem>>, %arg5: memref<1x128xf32, #tpu.memory_space<vmem>>, %arg6: memref<16x128xf32, #tpu.memory_space<vmem>>) attributes {dimension_semantics = [#tpu.dimension_semantics<parallel>], iteration_bounds = array<i64: 2>, scalar_prefetch = 0 : i64, scratch_operands = 0 : i64, tpu.core_type = #tpu.core_type<tc>, window_params = [{transform_indices = @transform_0, window_bounds = array<i64: 4, 16, 6>}, {pipeline_mode = #tpu.pipeline_mode<synchronous>, transform_indices = @transform_1, window_bounds = array<i64: 6, 128>}, {pipeline_mode = #tpu.pipeline_mode<synchronous>, transform_indices = @transform_2, window_bounds = array<i64: 1, 128>}, {pipeline_mode = #tpu.pipeline_mode<synchronous>, transform_indices = @transform_3, window_bounds = array<i64: 128, 128>}, {pipeline_mode = #tpu.pipeline_mode<synchronous>, transform_indices = @transform_4, window_bounds = array<i64: 1, 128>}, {transform_indices = @transform_5, window_bounds = array<i64: 16, 128>}]} {
    %c0 = arith.constant 0 : index
    %c0_0 = arith.constant 0 : index
    %c0_1 = arith.constant 0 : index
    %0 = vector.load %arg1[%c0, %c0_0, %c0_1] : memref<4x16x6xbf16, #tpu.memory_space<vmem>>, vector<4x16x6xbf16>
    %1 = vector.shape_cast %0 : vector<4x16x6xbf16> to vector<64x6xbf16>
    %c0_2 = arith.constant 0 : index
    %c0_3 = arith.constant 0 : index
    %2 = vector.load %arg2[%c0_2, %c0_3] : memref<6x128xbf16, #tpu.memory_space<vmem>>, vector<6x128xbf16>
    %c0_4 = arith.constant 0 : index
    %c0_5 = arith.constant 0 : index
    %3 = vector.load %arg3[%c0_4, %c0_5] : memref<1x128xf32, #tpu.memory_space<vmem>>, vector<1x128xf32>
    %cst = arith.constant dense<0.000000e+00> : vector<64x128xf32>
    %4 = tpu.matmul %1, %2, %cst {dimension_numbers = #tpu.dot_dimension_numbers<[1], [0], [0], [1], [0, 0, 1, 1], [], []>} : vector<64x6xbf16>, vector<6x128xbf16>, vector<64x128xf32> -> vector<64x128xf32>
    %5 = vector.broadcast %3 : vector<1x128xf32> to vector<64x128xf32>
    %6 = arith.addf %4, %5 : vector<64x128xf32>
    %cst_6 = arith.constant 0.000000e+00 : f32
    %7 = vector.broadcast %cst_6 : f32 to vector<64x128xf32>
    %8 = arith.maximumf %6, %7 : vector<64x128xf32>
    %9 = arith.truncf %8 : vector<64x128xf32> to vector<64x128xbf16>
    %c0_7 = arith.constant 0 : index
    %c0_8 = arith.constant 0 : index
    %10 = vector.load %arg4[%c0_7, %c0_8] : memref<128x128xbf16, #tpu.memory_space<vmem>>, vector<128x128xbf16>
    %c0_9 = arith.constant 0 : index
    %c0_10 = arith.constant 0 : index
    %11 = vector.load %arg5[%c0_9, %c0_10] : memref<1x128xf32, #tpu.memory_space<vmem>>, vector<1x128xf32>
    %cst_11 = arith.constant dense<0.000000e+00> : vector<64x128xf32>
    %12 = tpu.matmul %9, %10, %cst_11 {dimension_numbers = #tpu.dot_dimension_numbers<[1], [0], [0], [1], [0, 0, 1, 1], [], []>} : vector<64x128xbf16>, vector<128x128xbf16>, vector<64x128xf32> -> vector<64x128xf32>
    %13 = vector.broadcast %11 : vector<1x128xf32> to vector<64x128xf32>
    %14 = arith.addf %12, %13 : vector<64x128xf32>
    %cst_12 = arith.constant 0.000000e+00 : f32
    %15 = vector.broadcast %cst_12 : f32 to vector<64x128xf32>
    %16 = arith.maximumf %14, %15 : vector<64x128xf32>
    %17 = vector.extract_strided_slice %16 {offsets = [0, 0], sizes = [16, 128], strides = [1, 1]} : vector<64x128xf32> to vector<16x128xf32>
    %18 = vector.extract_strided_slice %16 {offsets = [16, 0], sizes = [16, 128], strides = [1, 1]} : vector<64x128xf32> to vector<16x128xf32>
    %19 = arith.maximumf %17, %18 : vector<16x128xf32>
    %20 = vector.extract_strided_slice %16 {offsets = [32, 0], sizes = [16, 128], strides = [1, 1]} : vector<64x128xf32> to vector<16x128xf32>
    %21 = arith.maximumf %19, %20 : vector<16x128xf32>
    %22 = vector.extract_strided_slice %16 {offsets = [48, 0], sizes = [16, 128], strides = [1, 1]} : vector<64x128xf32> to vector<16x128xf32>
    %23 = arith.maximumf %21, %22 : vector<16x128xf32>
    %c0_13 = arith.constant 0 : index
    %c0_14 = arith.constant 0 : index
    %24 = vector.load %arg6[%c0_13, %c0_14] : memref<16x128xf32, #tpu.memory_space<vmem>>, vector<16x128xf32>
    tpu.vector_store %arg6[%c0_13, %c0_14], %23 {strides = array<i32>} : memref<16x128xf32, #tpu.memory_space<vmem>>, vector<16x128xf32>,
    return
  }
  func.func @transform_0(%arg0: i32) -> (i32, i32, i32) {
    %c0_i32 = arith.constant 0 : i32
    %c0_i32_0 = arith.constant 0 : i32
    %c0_i32_1 = arith.constant 0 : i32
    return %c0_i32, %arg0, %c0_i32_0 : i32, i32, i32
  }
  func.func @transform_1(%arg0: i32) -> (i32, i32) {
    %c0_i32 = arith.constant 0 : i32
    %c0_i32_0 = arith.constant 0 : i32
    %c0_i32_1 = arith.constant 0 : i32
    return %c0_i32, %c0_i32_0 : i32, i32
  }
  func.func @transform_2(%arg0: i32) -> (i32, i32) {
    %c0_i32 = arith.constant 0 : i32
    %c0_i32_0 = arith.constant 0 : i32
    %c0_i32_1 = arith.constant 0 : i32
    return %c0_i32, %c0_i32_0 : i32, i32
  }
  func.func @transform_3(%arg0: i32) -> (i32, i32) {
    %c0_i32 = arith.constant 0 : i32
    %c0_i32_0 = arith.constant 0 : i32
    %c0_i32_1 = arith.constant 0 : i32
    return %c0_i32, %c0_i32_0 : i32, i32
  }
  func.func @transform_4(%arg0: i32) -> (i32, i32) {
    %c0_i32 = arith.constant 0 : i32
    %c0_i32_0 = arith.constant 0 : i32
    %c0_i32_1 = arith.constant 0 : i32
    return %c0_i32, %c0_i32_0 : i32, i32
  }
  func.func @transform_5(%arg0: i32) -> (i32, i32) {
    %c0_i32 = arith.constant 0 : i32
    %c0_i32_0 = arith.constant 0 : i32
    return %arg0, %c0_i32 : i32, i32
  }
}

</mosaic_0001>

<bundles_post_ra>
// kernel: tpu_custom_call.1
= control target key start
LH: loop header
LB: loop body
LE: loop exit
PB: predicated region body
PF: predicated region fallthrough
CT: control target
= control target key end

     0   :  { %10 = vsyncpa [#allocation4], 0  ;;  %s1061_s0 = inlined_call_operand.vmem [shape: bf16[4,32,6], index: 0, kind: input, shape index: {}]   ;;  %s1062_s1 = inlined_call_operand.vmem [shape: bf16[6,128], index: 1, kind: input, shape index: {}]   ;;  %s1063_s2 = inlined_call_operand.vmem [shape: f32[1,128], index: 2, kind: input, shape index: {}]   ;;  %s1064_s3 = inlined_call_operand.vmem [shape: bf16[128,128], index: 3, kind: input, shape index: {}]   ;;  %s1065_s4 = inlined_call_operand.vmem [shape: f32[1,128], index: 4, kind: input, shape index: {}]   ;;  %s1066_s5 = inlined_call_operand.hbm [shape: f32[32,128], index: 5, kind: output, shape index: {}]  }
   0x1   :  { %12 = vsyncpa [#allocation4 + $0x1], 0  ;;  %s912_s18 = smov 0   ;;  %s914_s19 = smov 0  }
   0x2   :  { %s916_s20 = smov 0   ;;  %s918_s21 = smov 0  }
   0x3 LB: > { %s659_s22 = sadd.s32 4294967295, %s877_s21   ;;  %s660_s23 = sadd.s32 4294967294, %s877_s21   ;;  %s877_s21 = sphi %s918_s21, %s1072_s21   ;;  %s873_s20 = sphi %s916_s20, %s1071_s20   ;;  %s869_s19 = sphi %s914_s19, %s1070_s19   ;;  %s865_s18 = sphi %s912_s18, %s1069_s18  }
   0x4   : > { %s935_s24 = sadd.s32 1, %s877_s21   ;;  %s25_s25 = sadd.s32 1, %s873_s20 }
   0x5   : > { %s22_s26 = ssub.s32 %s877_s21, %s935_s24  ;;  %p32_p0 = scmp.ne.s32.totalorder %s873_s20, %s869_s19 }
   0x6   : > { %p23_p1 = scmp.eq.s32.totalorder %s22_s26, 0  ;;  %p33_p2 = scmp.eq.s32.totalorder %s877_s21, 0 }
   0x7   : > { %p146_p3 = scmp.eq.s32.totalorder %s659_s22, 1  ;;  %p151_p4 = scmp.ne.s32.totalorder %s869_s19, %s865_s18 }
   0x8   : > { %s948_s27 = scalar_select %p23_p1, %s873_s20, %s25_s25  }
   0x9   : > { %p34_p5 = por %p33_p2, %p32_p0  ;;  %p950_p6 = por %p146_p3, %p32_p0 }
   0xa   : > { %p152_p7 = scmp.eq.s32.totalorder %s660_s23, 1  ;;  %p662_p9 = scmp.ge.s32.totalorder %s877_s21, 2 }
   0xc   : > { %p954_p8 = por %p152_p7, %p151_p4  ;;  %180 = sbr.rel (%p662_p9) target bundleno = 26 (0x1a), region = 32 }
  0x13   : > { %183 = sbr.rel (!%p34_p5) target bundleno = 26 (0x1a), region = 36  ;;  %s185_s30 = sand.u32 (%p34_p5), 1, %s873_s20  }
  0x14   : > { %s692_s6 = sshll.u32 (%p34_p5), %s877_s21, 3  ;;  %s663_s7 = sshll.u32 (%p34_p5), %s185_s30, 5 }
  0x15   : > { %s190_s10 = scalar_lea.vmem (%p34_p5), %s1061_s0, %s692_s6  ;;  %s187_s11 = scalar_lea.vmem (%p34_p5), [#allocation2], %s663_s7 }
  0x16   : > { %v206_v0 = vld [vmem:[%s190_s10] sm:$0xff] (%p34_p5)   ;;  %v210_v1 = vld [vmem:[%s190_s10 + $0x10] sm:$0xff] (%p34_p5)  }
  0x17   : > { %v214_v2 = vld [vmem:[%s190_s10 + $0x20] sm:$0xff] (%p34_p5)   ;;  %207 = vst [vmem:[%s187_s11] sm:$0xff] (%p34_p5), %v206_v0   ;;  %211 = vst [vmem:[%s187_s11 + $0x8] sm:$0xff] (%p34_p5), %v210_v1   ;;  %v218_v3 = vld [vmem:[%s190_s10 + $0x30] sm:$0xff] (%p34_p5)  }
  0x18   : > { %215 = vst [vmem:[%s187_s11 + $0x10] sm:$0xff] (%p34_p5), %v214_v2   ;;  %219 = vst [vmem:[%s187_s11 + $0x18] sm:$0xff] (%p34_p5), %v218_v3  }
  0x1a PF: > { %p666_p10 = scmp.ge.s32.totalorder %s877_s21, 1  ;;  %p259_p11 = scmp.lt.s32.totalorder %s877_s21, 3 }
  0x1c   : > { %p260_p12 = pnand %p666_p10, %p259_p11 }
  0x1d   : > { %v304_v4 = vld [vmem:[%s1062_s1] sm:$0x7] (!%p260_p12)  ;;  %vm345_vm0 = vcmask (!%p260_p12), 1042432   ;;  %s972_s14 = sand.u32 (!%p260_p12), 1, %s869_s19   ;;  %vm332_vm1 = vcmask (!%p260_p12), 48128   ;;  %v808_v7 = vld [vmem:[%s1064_s3 + $0x8] sm:$0xff] (!%p260_p12)  }
  0x1e   : > { %263 = sbr.rel (%p260_p12) target bundleno = 502 (0x1f6), region = 77  ;;  %v807_v5 = vld [vmem:[%s1064_s3] sm:$0xff] (!%p260_p12)   ;;  %761 = vmatprep.subr.msk.bf16.mxu0 (!%p260_p12), %vm345_vm0, %v304_v4  ;;  %v347_v6 = vsel (!%p260_p12), %vm345_vm0, %v304_v4, 0  ;;  %s667_s17 = sshll.u32 (!%p260_p12), %s972_s14, 5  ;;  %v809_v11 = vld [vmem:[%s1064_s3 + $0x10] sm:$0xff] (!%p260_p12)   ;;  %v810_v13 = vld [vmem:[%s1064_s3 + $0x18] sm:$0xff] (!%p260_p12)  }
  0x1f   : > { %712 = vmatpush3.bf16.msra.mxu0 (!%p260_p12), %v347_v6  ;;  %745 = vmatprep.subr.bf16.mxu1 (!%p260_p12), %v807_v5  ;;  %s268_s26 = scalar_lea.vmem (!%p260_p12), [#allocation2], %s667_s17  ;;  %v811_v14 = vld [vmem:[%s1064_s3 + $0x20] sm:$0xff] (!%p260_p12)   ;;  %v812_v15 = vld [vmem:[%s1064_s3 + $0x28] sm:$0xff] (!%p260_p12)   ;;  %v813_v16 = vld [vmem:[%s1064_s3 + $0x30] sm:$0xff] (!%p260_p12)   ;;  %s668_s6 = sshll.u32 (!%p260_p12), %s972_s14, 4 }
  0x20   : > { %v803_v8 = vld [vmem:[%s268_s26] sm:$0xff] (!%p260_p12)   ;;  %721 = vmatprep.subr.bf16.mxu0 (!%p260_p12), %v807_v5  ;;  %753 = vmatpush3.bf16.msra.mxu1 (!%p260_p12), %v807_v5  ;;  %v804_v9 = vld [vmem:[%s268_s26 + $0x8] sm:$0xff] (!%p260_p12)   ;;  %v805_v10 = vld [vmem:[%s268_s26 + $0x10] sm:$0xff] (!%p260_p12)   ;;  %s292_s7 = scalar_lea.vmem (!%p260_p12), [#allocation3], %s668_s6  ;;  %s693_s9 = sshll.u32 (!%p260_p12), %s659_s22, 8 }
  0x21   : > { %746 = vmatprep.subr.bf16.mxu1 (!%p260_p12), %v808_v7  ;;  %713 = vmatprep.mubr.msk.bf16.mxu0 (!%p260_p12), %vm332_vm1, %v803_v8  ;;  %v806_v12 = vld [vmem:[%s268_s26 + $0x18] sm:$0xff] (!%p260_p12)   ;;  %v669_v18 = vld [vmem:[%s1063_s2] ss:$0 sm:$0xff] (!%p260_p12)  ;;  %s592_s8 = sshll.u32 (!%p260_p12), %s292_s7, 4  ;;  %s1015_s12 = scalar_lea.hbm (!%p260_p12), %s1066_s5, %s693_s9  ;;  %s1017_s8 = int_to_ptr.vmem [resolvable:$true] %s592_s8 }
  0x22   : > { %714 = vmatmul.mubr.msk.bf16.vlgmr.msra.gmra.mrb[0].mxu0 (!%p260_p12), %vm332_vm1, %v804_v9  ;;  %v814_v17 = vld [vmem:[%s1064_s3 + $0x38] sm:$0xff] (!%p260_p12)   ;;  %v678_v47 = vld [vmem:[%s1065_s4] ss:$0 sm:$0xff] (!%p260_p12)  ;;  %s579_s13 = scalar_lea.sflag (!%p260_p12), [#allocation4], %s972_s14  ;;  %s815_s15 = scalar_lea.vmem (!%p260_p12), %s1017_s8, 256 }
  0x23   : > { %717 = vmatprep.mubr.msk.bf16.mxu0 (!%p260_p12), %vm332_vm1, %v805_v10  ;;  %722 = vmatpush3.bf16.msra.mxu0 (!%p260_p12), %v807_v5  ;;  %p816_p13 = scmp.ne.s32.totalorder (!%p260_p12), %s1017_s8, %s815_s15  ;;  %s879_s22 = smov (!%p260_p12), [#allocation3]  }
  0x24   : > { %723 = vmatprep.subr.bf16.mxu0 (!%p260_p12), %v808_v7  ;;  %754 = vmatpush3.bf16.msra.mxu1 (!%p260_p12), %v808_v7  ;;  %s819_s16 = sshll.u32 (!%p260_p12), %s879_s22, 4  ;;  %s820_s16 = int_to_ptr.vmem [resolvable:$false] %s819_s16 }
  0x25   : > { %747 = vmatprep.subr.bf16.mxu1 %v809_v11  ;;  %p817_p0 = pnand %p816_p13, %p950_p6  ;;  %s821_s17 = scalar_lea.vmem %s820_s16, 512 }
  0x26   : > { %p822_p2 = scmp.lt.s32.totalorder %s1017_s8, %s820_s16  ;;  %p823_p3 = scmp.lt.s32.totalorder %s821_s17, %s815_s15 }
  0x27   : > { %724 = vmatpush3.bf16.msra.mxu0 %v808_v7  ;;  %p818_p1 = pneg %p817_p0 }
  0x28   : > { %725 = vmatprep.subr.bf16.mxu0 %v809_v11  ;;  %755 = vmatpush3.bf16.msra.mxu1 %v809_v11  ;;  %p824_p4 = por %p823_p3, %p822_p2 }
  0x29   : > { %748 = vmatprep.subr.bf16.mxu1 %v810_v13 }
  0x2a   : > { %718 = vmatmul.mubr.msk.bf16.gmra.mrb[4].mxu0 %vm332_vm1, %v806_v12  ;;  %p825_p5 = pnand %p824_p4, %p818_p1 }
  0x2b   : > { %726 = vmatpush3.bf16.msra.mxu0 %v809_v11 }
  0x2c   : > { %727 = vmatprep.subr.bf16.mxu0 %v810_v13  ;;  %756 = vmatpush3.bf16.msra.mxu1 %v810_v13 }
  0x2d   : > { %749 = vmatprep.subr.bf16.mxu1 %v811_v14 }
  0x2f   : > { %728 = vmatpush3.bf16.msra.mxu0 %v810_v13 }
  0x30   : > { %729 = vmatprep.subr.bf16.mxu0 %v811_v14  ;;  %757 = vmatpush3.bf16.msra.mxu1 %v811_v14 }
  0x31   : > { %750 = vmatprep.subr.bf16.mxu1 %v812_v15 }
  0x33   : > { %730 = vmatpush3.bf16.msra.mxu0 %v811_v14 }
  0x34   : > { %731 = vmatprep.subr.bf16.mxu0 %v812_v15  ;;  %758 = vmatpush3.bf16.msra.mxu1 %v812_v15 }
  0x35   : > { %751 = vmatprep.subr.bf16.mxu1 %v813_v16 }
  0x37   : > { %732 = vmatpush3.bf16.msra.mxu0 %v812_v15 }
  0x38   : > { %733 = vmatprep.subr.bf16.mxu0 %v813_v16  ;;  %759 = vmatpush3.bf16.msra.mxu1 %v813_v16 }
  0x39   : > { %752 = vmatprep.subr.bf16.mxu1 %v814_v17 }
  0x3b   : > { %734 = vmatpush3.bf16.msra.mxu0 %v813_v16 }
  0x3c   : > { %735 = vmatprep.subr.bf16.mxu0 %v814_v17  ;;  %760 = vmatpush3.bf16.msra.mxu1 %v814_v17 }
  0x3f   : > { %736 = vmatpush3.bf16.msra.mxu0 %v814_v17 }
  0xf5   : > { %v715_v19 = vpop.f32.mrb[0].mxu0 }
  0xf6   : > { %v392_v20 = vadd.f32 %v715_v19, %v669_v18  ;;  %v383_v21 = vpop.f32.mrb[1].mxu0 }
  0xf7   : > { %v384_v22 = vadd.f32 %v669_v18, %v383_v21  ;;  %v716_v23 = vpop.f32.mrb[2].mxu0 }
  0xf8   : > { %v395_v24 = vadd.f32 %v716_v23, %v669_v18  ;;  %v386_v25 = vpop.f32.mrb[3].mxu0  ;;  %v416_v27 = vmax.f32 %v392_v20, 0.0 }
  0xf9   : > { %v387_v26 = vadd.f32 %v669_v18, %v386_v25  ;;  %v414_v29 = vmax.f32 %v384_v22, 0.0 }
  0xfa   : > { %v417_v28 = vmax.f32 %v395_v24, 0.0 }
  0xfb   : > { %v415_v30 = vmax.f32 %v387_v26, 0.0 }
  0xfc   : > { %v423_v31 = vpack.c.bf16 %v417_v28, %v416_v27 }
  0xfd   : > { %v422_v32 = vpack.c.bf16 %v415_v30, %v414_v29  ;;  %v719_v33 = vpop.f32.mrb[4].mxu0 }
  0xfe   : > { %v408_v34 = vadd.f32 %v719_v33, %v669_v18  ;;  %v399_v35 = vpop.f32.mrb[5].mxu0 }
  0xff   : > { %v400_v36 = vadd.f32 %v669_v18, %v399_v35  ;;  %v720_v37 = vpop.f32.mrb[6].mxu0  ;;  %737 = vmatprep.mubr.bf16.mxu0 %v422_v32 }
 0x100   : > { %v411_v38 = vadd.f32 %v720_v37, %v669_v18  ;;  %v402_v39 = vpop.f32.mrb[7].mxu0  ;;  %738 = vmatmul.mubr.bf16.vlgmr.msra.gmra.mrb[8].mxu0 %v423_v31  ;;  %v420_v41 = vmax.f32 %v408_v34, 0.0 }
 0x101   : > { %v403_v40 = vadd.f32 %v669_v18, %v402_v39  ;;  %v418_v43 = vmax.f32 %v400_v36, 0.0 }
 0x102   : > { %v421_v42 = vmax.f32 %v411_v38, 0.0 }
 0x103   : > { %v419_v44 = vmax.f32 %v403_v40, 0.0 }
 0x104   : > { %v425_v45 = vpack.c.bf16 %v421_v42, %v420_v41 }
 0x105   : > { %v424_v46 = vpack.c.bf16 %v419_v44, %v418_v43 }
 0x107   : > { %741 = vmatprep.mubr.bf16.mxu1 %v424_v46 }
 0x108   : > { %742 = vmatmul.mubr.bf16.vlgmr.msra.gmra.mrb[0].mxu1 %v425_v45 }
 0x1d3   : > { %v739_v48 = vpop.f32.mrb[8].mxu0 }
 0x1d4   : > { %v540_v49 = vadd.f32 %v739_v48, %v678_v47  ;;  %v531_v50 = vpop.f32.mrb[9].mxu0 }
 0x1d5   : > { %v532_v51 = vadd.f32 %v678_v47, %v531_v50  ;;  %v740_v52 = vpop.f32.mrb[10].mxu0 }
 0x1d6   : > { %v564_v53 = vmax.f32 %v540_v49, 0.0  ;;  %v543_v54 = vadd.f32 %v740_v52, %v678_v47  ;;  %v534_v55 = vpop.f32.mrb[11].mxu0 }
 0x1d7   : > { %v562_v56 = vmax.f32 %v532_v51, 0.0  ;;  %v535_v57 = vadd.f32 %v678_v47, %v534_v55 }
 0x1d8   : > { %v565_v58 = vmax.f32 %v543_v54, 0.0 }
 0x1d9   : > { %v570_v59 = vmax.f32 %v562_v56, %v564_v53  ;;  %v563_v60 = vmax.f32 %v535_v57, 0.0 }
 0x1db   : > { %v571_v61 = vmax.f32 %v563_v60, %v565_v58  ;;  %v743_v62 = vpop.f32.mrb[0].mxu1 }
 0x1dc   : > { %v547_v63 = vpop.f32.mrb[1].mxu1  ;;  %v556_v0 = vadd.f32 %v743_v62, %v678_v47 }
 0x1dd   : > { %v548_v1 = vadd.f32 %v678_v47, %v547_v63  ;;  %v744_v2 = vpop.f32.mrb[2].mxu1 }
 0x1de   : > { %v550_v3 = vpop.f32.mrb[3].mxu1  ;;  %v559_v5 = vadd.f32 %v744_v2, %v678_v47  ;;  %v568_v7 = vmax.f32 %v556_v0, 0.0 }
 0x1df   : > { %v566_v4 = vmax.f32 %v548_v1, 0.0  ;;  %v551_v6 = vadd.f32 %v678_v47, %v550_v3 }
 0x1e0   : > { %v569_v11 = vmax.f32 %v559_v5, 0.0 }
 0x1e1   : > { %v572_v8 = vmax.f32 %v570_v59, %v566_v4  ;;  %v567_v9 = vmax.f32 %v551_v6, 0.0 }
 0x1e3   : > { %v574_v10 = vmax.f32 %v572_v8, %v568_v7  ;;  %v573_v12 = vmax.f32 %v571_v61, %v567_v9 }
 0x1e5   : > { %576 = vst [vmem:[%s292_s7] sm:$0xff] %v574_v10  ;;  %v575_v13 = vmax.f32 %v573_v12, %v569_v11 }
 0x1e7   : > { %577 = vst [vmem:[%s292_s7 + $0x8] sm:$0xff] %v575_v13 }
 0x1e8   : > { %828 = shalt.err (!%p825_p5)
}
 0x1e9   : > { %s829_s23 = scalar_lea.hbm %s1015_s12, 256  ;;  %s833_s30 = scalar_lea.hbm %s1066_s5, 512 }
 0x1ea   : > { %p830_p7 = scmp.ne.s32.totalorder %s1015_s12, %s829_s23  ;;  %p834_p12 = scmp.lt.u32.totalorder %s1015_s12, %s1066_s5 }
 0x1eb   : > { %p835_p13 = scmp.lt.u32.totalorder %s833_s30, %s829_s23  ;;  %p837_p1 = scmp.lt.u32.totalorder %s829_s23, %s1015_s12 }
 0x1ec   : > { %p831_p10 = pnand %p830_p7, %p950_p6 }
 0x1ed   : > { %p836_p0 = por %p835_p13, %p834_p12 }
 0x1ee   : > { %p832_p11 = pneg %p831_p10 }
 0x1ef   : > { %p838_p2 = por %p837_p1, %p836_p0 }
 0x1f1   : > { %p839_p3 = pnand %p838_p2, %p832_p11 }
 0x1f3   : > { %842 = shalt.err (!%p839_p3)
}
 0x1f4   : > { %s880_s9 = smov 128   ;;  %s881_s10 = smov 8  }
 0x1f5   : > { %762 = dma.vmem_to_hbm [thread:$0]  (%p950_p6), %s1017_s8, 256, %s1015_s12, %s579_s13, %s880_s9, %s880_s9, %s881_s10  }
 0x1f6 PF: > { %s607_s11 = sand.u32 1, %s865_s18   ;;  %p765_p4 = pnand %p662_p9, %p954_p8 }
 0x1f7   : > { %s608_s15 = scalar_lea.sflag [#allocation4], %s607_s11 }
 0x1f8   : > { %860 = dma.done.wait (!%p765_p4), %s608_s15, 256  }
 0x1f9   : > { %862 = vsyncadd (!%p765_p4), %s608_s15, 4294967040  ;;  %p15_p5 = scmp.ge.s32.totalorder %s935_s24, 4   ;;  %s1069_s18 = smov %s869_s19 }
 0x1fa   : > { %s1070_s19 = smov %s873_s20  ;;  %s1071_s20 = smov %s948_s27 }
 0x1fb   : > { %s1072_s21 = smov %s935_s24  ;;  %17 = sbr.rel (!%p15_p5) target bundleno = 3 (0x3), region = 121 }
 0x202   :  { %613 = vsyncpa [#allocation4], 1 }
 0x203   :  { %615 = vsyncpa [#allocation4 + $0x1], 1 }

</bundles_post_ra>
